<compile_context>
chip_gen: v7x
topology: tpu7x:2x2x1
jax: 0.10.0
libtpu: 0.0.40
codegen_flags: <defaults>
</compile_context>

<pallas_src>
import functools

import jax
import jax.numpy as jnp
from jax.experimental import pallas as pl
from jax.experimental.pallas import tpu as pltpu


def _label_smoothing_kernel(pred_ref, tgt_ref, out_ref, *,
                            classes, smoothing, n_rows, tile_rows):
    confidence = 1.0 - smoothing
    smooth_val = smoothing / (classes - 1)

    # (C, tile_rows): classes on sublanes, one sample per lane.
    x = pred_ref[...].astype(jnp.float32)                 # cast on the VPU
    tgt = tgt_ref[...]                                    # (1, tile_rows) int32

    # Numerically stable log-softmax pieces along the class (sublane) axis.
    m = jnp.max(x, axis=0, keepdims=True)                 # (1, tile_rows)
    z = x - m
    lse = jnp.log(jnp.sum(jnp.exp(z), axis=0, keepdims=True))
    sum_z = jnp.sum(z, axis=0, keepdims=True)

    # z at the target class: compare+select against the lane-dense target row.
    cls = jax.lax.broadcasted_iota(jnp.int32, x.shape, 0)
    z_tgt = jnp.sum(jnp.where(cls == tgt, z, 0.0), axis=0, keepdims=True)

    # loss = -sum(true_dist * logp) = lse - sv*sum_z - (conf - sv)*z_tgt
    per_row = lse - smooth_val * sum_z - (confidence - smooth_val) * z_tgt

    # Mask padded rows (ragged tail) -- select, never a multiply.
    col = (pl.program_id(0) * tile_rows
           + jax.lax.broadcasted_iota(jnp.int32, (1, tile_rows), 1))
    per_row = jnp.where(col < n_rows, per_row, 0.0)

    # One partial sum per grid step, packed into lane 0 of a lane-dense block.
    partial = jnp.sum(per_row, axis=1, keepdims=True)     # (1, 1)
    lane = jax.lax.broadcasted_iota(jnp.int32, (1, 128), 1)
    out_ref[...] = jnp.where(lane == 0, partial, 0.0)     # (1, 128) full-width vst


def label_smoothing_loss(pred, target, *, classes=5, smoothing=0.0,
                         tile_rows=8192):
    """pred: (N, C) float (any float dtype), target: (N,) int. Scalar f32 loss.

    Matches PyTorch LabelSmoothingLoss.forward(pred, target) with dim=-1.
    """
    n, c = pred.shape
    assert c == classes, (c, classes)
    assert classes > 1, "smoothing/(classes-1) requires classes > 1"

    def _round_up(v, m):
        return ((v + m - 1) // m) * m

    # Rows live on the lane axis -> tile must be a multiple of 128 (dtype
    # independent).  Clamp to the (128-rounded) batch so tiny batches don't
    # allocate an oversized block.
    tile = max(128, min(int(tile_rows), _round_up(n, 128)))
    tile = _round_up(tile, 128)
    grid = pl.cdiv(n, tile)
    n_pad = grid * tile

    # Rows-on-lanes layout.  TODO(synk): have the producer emit (C, N) logits
    # directly so this (small, XLA-fused) pad+transpose disappears entirely.
    pred_t = jnp.pad(pred, ((0, n_pad - n), (0, 0))).T            # (C, n_pad)
    tgt_t = jnp.pad(target.astype(jnp.int32), (0, n_pad - n),
                    constant_values=classes).reshape(1, n_pad)    # (1, n_pad)

    kern = functools.partial(
        _label_smoothing_kernel,
        classes=classes, smoothing=float(smoothing), n_rows=n, tile_rows=tile)

    bytes_accessed = (n_pad * c * pred.dtype.itemsize   # logits (native dtype)
                      + n_pad * 4                       # targets
                      + grid * 128 * 4)                 # per-step partial sums

    partials = pl.pallas_call(
        kern,
        out_shape=jax.ShapeDtypeStruct((1, grid * 128), jnp.float32),
        grid=(grid,),
        in_specs=[
            pl.BlockSpec((c, tile), lambda i: (0, i)),   # logits: classes on sublanes
            pl.BlockSpec((1, tile), lambda i: (0, i)),   # targets: lane-dense
        ],
        out_specs=pl.BlockSpec((1, 128), lambda i: (0, i)),
        compiler_params=pltpu.CompilerParams(
            dimension_semantics=("parallel",)),          # megacore-friendly (v7x)
        cost_estimate=pl.CostEstimate(
            flops=10 * n_pad * c,
            transcendentals=n_pad * c + n_pad,
            bytes_accessed=bytes_accessed),
    )(pred_t, tgt_t)

    # Sum of per-step partials / true batch size (padded rows were masked to 0).
    return jnp.sum(partials) / jnp.float32(n)


def _reference(pred, target, *, classes, smoothing):
    confidence = 1.0 - smoothing
    logp = jax.nn.log_softmax(pred.astype(jnp.float32), axis=-1)
    true_dist = jnp.full_like(logp, smoothing / (classes - 1))
    true_dist = true_dist.at[jnp.arange(pred.shape[0]), target].set(confidence)
    return jnp.mean(jnp.sum(-true_dist * logp, axis=-1))


if __name__ == "__main__":
    key = jax.random.PRNGKey(0)
    k1, k2, k3, k4, k5, k6 = jax.random.split(key, 6)

    # Case 1: f32, classes=5 (module default), single grid step, ragged tail.
    N1, C1, sm1 = 50, 5, 0.1
    pred1 = jax.random.normal(k1, (N1, C1), dtype=jnp.float32)
    tgt1 = jax.random.randint(k2, (N1,), 0, C1, dtype=jnp.int32)
    loss1 = jax.block_until_ready(
        label_smoothing_loss(pred1, tgt1, classes=C1, smoothing=sm1,
                             tile_rows=128))
    ref1 = _reference(pred1, tgt1, classes=C1, smoothing=sm1)
    assert jnp.allclose(loss1, ref1, atol=1e-5, rtol=1e-5), (loss1, ref1)

    # Case 2: bf16 logits streamed in native dtype (cast on the VPU in-kernel).
    N2, C2, sm2 = 128, 8, 0.2
    pred2 = jax.random.normal(k3, (N2, C2), dtype=jnp.float32).astype(jnp.bfloat16)
    tgt2 = jax.random.randint(k4, (N2,), 0, C2, dtype=jnp.int32)
    loss2 = jax.block_until_ready(
        label_smoothing_loss(pred2, tgt2, classes=C2, smoothing=sm2,
                             tile_rows=128))
    ref2 = _reference(pred2, tgt2, classes=C2, smoothing=sm2)
    assert jnp.allclose(loss2, ref2, atol=1e-4, rtol=1e-4), (loss2, ref2)

    # Case 3: multi-step grid + ragged last block + smoothing=0.0 (plain CE).
    N3, C3, sm3 = 300, 5, 0.0
    pred3 = jax.random.normal(k5, (N3, C3), dtype=jnp.float32)
    tgt3 = jax.random.randint(k6, (N3,), 0, C3, dtype=jnp.int32)
    loss3 = jax.block_until_ready(
        label_smoothing_loss(pred3, tgt3, classes=C3, smoothing=sm3,
                             tile_rows=128))
    ref3 = _reference(pred3, tgt3, classes=C3, smoothing=sm3)
    assert jnp.allclose(loss3, ref3, atol=1e-5, rtol=1e-5), (loss3, ref3)

    print("KERNEL_OK")
</pallas_src>

<mosaic_0001>
module attributes {stable_mosaic.version = 11 : i64} {
  func.func @_label_smoothing_kernel(%arg0: i32, %arg1: memref<5x128xf32, #tpu.memory_space<vmem>>, %arg2: memref<1x128xi32, #tpu.memory_space<vmem>>, %arg3: memref<1x128xf32, #tpu.memory_space<vmem>>) attributes {dimension_semantics = [#tpu.dimension_semantics<parallel>], iteration_bounds = array<i64: 1>, scalar_prefetch = 0 : i64, scratch_operands = 0 : i64, tpu.core_type = #tpu.core_type<tc>, window_params = [{transform_indices = @transform_0, window_bounds = array<i64: 5, 128>}, {transform_indices = @transform_1, window_bounds = array<i64: 1, 128>}, {transform_indices = @transform_2, window_bounds = array<i64: 1, 128>}]} {
    %c0 = arith.constant 0 : index
    %c0_0 = arith.constant 0 : index
    %0 = vector.load %arg1[%c0, %c0_0] : memref<5x128xf32, #tpu.memory_space<vmem>>, vector<5x128xf32>
    %c0_1 = arith.constant 0 : index
    %c0_2 = arith.constant 0 : index
    %1 = vector.load %arg2[%c0_1, %c0_2] : memref<1x128xi32, #tpu.memory_space<vmem>>, vector<1x128xi32>
    %cst = arith.constant dense<0xFF800000> : vector<128xf32>
    %2 = vector.multi_reduction <maximumf>, %0, %cst [0] : vector<5x128xf32> to vector<128xf32>
    %3 = vector.shape_cast %2 : vector<128xf32> to vector<1x128xf32>
    %4 = vector.broadcast %3 : vector<1x128xf32> to vector<5x128xf32>
    %5 = arith.subf %0, %4 : vector<5x128xf32>
    %6 = math.exp %5 : vector<5x128xf32>
    %cst_3 = arith.constant dense<0.000000e+00> : vector<128xf32>
    %7 = vector.multi_reduction <add>, %6, %cst_3 [0] : vector<5x128xf32> to vector<128xf32>
    %8 = vector.shape_cast %7 : vector<128xf32> to vector<1x128xf32>
    %9 = math.log %8 : vector<1x128xf32>
    %cst_4 = arith.constant dense<0.000000e+00> : vector<128xf32>
    %10 = vector.multi_reduction <add>, %5, %cst_4 [0] : vector<5x128xf32> to vector<128xf32>
    %11 = vector.shape_cast %10 : vector<128xf32> to vector<1x128xf32>
    %12 = tpu.iota {dimensions = array<i32: 0>} : vector<5x128xi32>
    %13 = vector.broadcast %1 : vector<1x128xi32> to vector<5x128xi32>
    %14 = arith.cmpi eq, %12, %13 : vector<5x128xi32>
    %cst_5 = arith.constant 0.000000e+00 : f32
    %15 = vector.broadcast %cst_5 : f32 to vector<5x128xf32>
    %16 = arith.select %14, %5, %15 : vector<5x128xi1>, vector<5x128xf32>
    %cst_6 = arith.constant dense<0.000000e+00> : vector<128xf32>
    %17 = vector.multi_reduction <add>, %16, %cst_6 [0] : vector<5x128xf32> to vector<128xf32>
    %18 = vector.shape_cast %17 : vector<128xf32> to vector<1x128xf32>
    %cst_7 = arith.constant 2.500000e-02 : f32
    %19 = vector.broadcast %cst_7 : f32 to vector<1x128xf32>
    %20 = arith.mulf %19, %11 : vector<1x128xf32>
    %21 = arith.subf %9, %20 : vector<1x128xf32>
    %cst_8 = arith.constant 8.750000e-01 : f32
    %22 = vector.broadcast %cst_8 : f32 to vector<1x128xf32>
    %23 = arith.mulf %22, %18 : vector<1x128xf32>
    %24 = arith.subf %21, %23 : vector<1x128xf32>
    %c128_i32 = arith.constant 128 : i32
    %25 = arith.muli %arg0, %c128_i32 : i32
    %26 = tpu.iota {dimensions = array<i32: 1>} : vector<1x128xi32>
    %27 = vector.broadcast %25 : i32 to vector<1x128xi32>
    %28 = arith.addi %27, %26 : vector<1x128xi32>
    %c50_i32 = arith.constant 50 : i32
    %29 = vector.broadcast %c50_i32 : i32 to vector<1x128xi32>
    %30 = arith.cmpi slt, %28, %29 : vector<1x128xi32>
    %cst_9 = arith.constant 0.000000e+00 : f32
    %31 = vector.broadcast %cst_9 : f32 to vector<1x128xf32>
    %32 = arith.select %30, %24, %31 : vector<1x128xi1>, vector<1x128xf32>
    %cst_10 = arith.constant dense<0.000000e+00> : vector<1xf32>
    %33 = vector.multi_reduction <add>, %32, %cst_10 [1] : vector<1x128xf32> to vector<1xf32>
    %34 = vector.shape_cast %33 : vector<1xf32> to vector<1x1xf32>
    %35 = tpu.iota {dimensions = array<i32: 1>} : vector<1x128xi32>
    %c0_i32 = arith.constant 0 : i32
    %36 = vector.broadcast %c0_i32 : i32 to vector<1x128xi32>
    %37 = arith.cmpi eq, %35, %36 : vector<1x128xi32>
    %cst_11 = arith.constant 0.000000e+00 : f32
    %38 = vector.shape_cast %34 : vector<1x1xf32> to vector<1x1xf32>
    %39 = vector.broadcast %38 : vector<1x1xf32> to vector<1x128xf32>
    %40 = vector.broadcast %cst_11 : f32 to vector<1x128xf32>
    %41 = arith.select %37, %39, %40 : vector<1x128xi1>, vector<1x128xf32>
    %c0_12 = arith.constant 0 : index
    %c0_13 = arith.constant 0 : index
    %42 = vector.load %arg3[%c0_12, %c0_13] : memref<1x128xf32, #tpu.memory_space<vmem>>, vector<1x128xf32>
    tpu.vector_store %arg3[%c0_12, %c0_13], %41 {strides = array<i32>} : memref<1x128xf32, #tpu.memory_space<vmem>>, vector<1x128xf32>,
    return
  }
  func.func @transform_0(%arg0: i32) -> (i32, i32) {
    %c0_i32 = arith.constant 0 : i32
    %c0_i32_0 = arith.constant 0 : i32
    return %c0_i32, %arg0 : i32, i32
  }
  func.func @transform_1(%arg0: i32) -> (i32, i32) {
    %c0_i32 = arith.constant 0 : i32
    %c0_i32_0 = arith.constant 0 : i32
    return %c0_i32, %arg0 : i32, i32
  }
  func.func @transform_2(%arg0: i32) -> (i32, i32) {
    %c0_i32 = arith.constant 0 : i32
    %c0_i32_0 = arith.constant 0 : i32
    return %c0_i32, %arg0 : i32, i32
  }
}

</mosaic_0001>

<bundles_post_ra>
// kernel: tpu_custom_call.1
= control target key start
LH: loop header
LB: loop body
LE: loop exit
PB: predicated region body
PF: predicated region fallthrough
CT: control target
= control target key end

     0   :  { %7 = vsyncpa [#allocation3], 0  ;;  %s202_s0 = inlined_call_operand.hbm [shape: f32[5,128], index: 0, kind: input, shape index: {}]   ;;  %s203_s1 = inlined_call_operand.vmem [shape: s32[1,128], index: 1, kind: input, shape index: {}]   ;;  %s204_s2 = inlined_call_operand.hbm [shape: f32[1,128], index: 2, kind: output, shape index: {}]  }
   0x1   :  { %8 = vsyncpa [#allocation4], 0  ;;  %s154_s9 = smov [#allocation2]   ;;  %s106_s13 = scalar_lea.hbm %s202_s0, 128 }
   0x2   :  { %s15_s10 = sshll.u32 %s154_s9, 4  ;;  %p107_p0 = scmp.ne.s32.totalorder %s202_s0, %s106_s13  ;;  %s16_s10 = int_to_ptr.vmem [resolvable:$true] %s15_s10 }
   0x3   :  { %p110_p1 = scmp.lt.u32.totalorder %s106_s13, %s202_s0 }
   0x5   :  { %p112_p2 = pnand %p110_p1, %p107_p0 }
   0x7   :  { %115 = shalt.err (!%p112_p2)
}
   0x8   :  { %s116_s18 = scalar_lea.vmem %s16_s10, 128  ;;  %p121_p4 = scmp.lt.s32.totalorder %s16_s10, %s16_s10 }
   0x9   :  { %p117_p3 = scmp.ne.s32.totalorder %s16_s10, %s116_s18  ;;  %p122_p5 = scmp.lt.s32.totalorder %s116_s18, %s116_s18 }
   0xb   :  { %p123_p6 = por %p122_p5, %p121_p4 }
   0xd   :  { %p124_p7 = pnand %p123_p6, %p117_p3 }
   0xf   :  { %127 = shalt.err (!%p124_p7)
}
  0x10   :  { %18 = dma.hbm_to_vmem [thread:$0]  %s202_s0, 128, %s16_s10, [#allocation3]  }
  0x11   :  { %150 = dma.done.wait [#allocation3], 128  }
  0x12   :  { %151 = vsyncadd [#allocation3], 4294967168  ;;  %vm26_vm0 = vcmask 1044480   ;;  %v24_v0 = vld [vmem:[#allocation2] sm:$0x1f]  ;;  %v53_v8 = vlaneseq  ;;  %s155_s0 = smov [#allocation5]  }
  0x13   :  { %v27_v1 = vsel %vm26_vm0, %v24_v0, -inf  ;;  %v99_v12 = vld [vmem:[%s203_s1] ss:$0 sm:$0xff]  ;;  %s90_s1 = sshll.u32 %s155_s0, 4  ;;  %s91_s1 = int_to_ptr.vmem [resolvable:$true] %s90_s1 }
  0x14   :  { %v28_v2 = vrot.slane %v27_v1, 4  ;;  %v54_v11 = vshrl.u32 %v53_v8, 7  ;;  %v74_v38 = vand.u32 127, %v53_v8  ;;  %s128_s23 = scalar_lea.vmem %s91_s1, 16  ;;  %s132_s24 = scalar_lea.vmem %s91_s1, 32 }
  0x15   :  { %p129_p8 = scmp.ne.s32.totalorder %s91_s1, %s128_s23  ;;  %p133_p9 = scmp.lt.s32.totalorder %s91_s1, %s91_s1 }
  0x16   :  { %v29_v3 = vmax.f32 %v27_v1, %v28_v2  ;;  %vm59_vm1 = vcmp.eq.s32.totalorder %v54_v11, %v99_v12  ;;  %vm77_vm2 = vcmp.lt.s32.totalorder %v74_v38, 50  ;;  %vm81_vm3 = vcmp.eq.s32.totalorder %v74_v38, 0  ;;  %p134_p10 = scmp.lt.s32.totalorder %s132_s24, %s128_s23 }
  0x18   :  { %v30_v4 = vrot.slane %v29_v3, 2  ;;  %p135_p11 = por %p134_p10, %p133_p9 }
  0x1a   :  { %v31_v5 = vmax.f32 %v29_v3, %v30_v4  ;;  %p136_p12 = pnand %p135_p11, %p129_p8 }
  0x1c   :  { %v32_v6 = vrot.slane %v31_v5, 1 }
  0x1e   :  { %v33_v7 = vmax.f32 %v31_v5, %v32_v6 }
  0x20   :  { %v34_v9 = vsub.f32 %v24_v0, %v33_v7 }
  0x22   :  { %v35_v10 = vmul.f32 1.442695, %v34_v9  ;;  %v60_v13 = vsel %vm59_vm1, %v34_v9, 0.0  ;;  %v46_v14 = vsel %vm26_vm0, %v34_v9, 0.0 }
  0x23   :  { %v61_v15 = vsel %vm26_vm0, %v60_v13, 0.0  ;;  %v47_v16 = vrot.slane %v46_v14, 4 }
  0x24   :  { %102 = vpow2.f32 %v35_v10  ;;  %v62_v19 = vrot.slane %v61_v15, 4 }
  0x25   :  { %v48_v21 = vadd.f32 %v47_v16, %v46_v14 }
  0x26   :  { %v63_v23 = vadd.f32 %v62_v19, %v61_v15 }
  0x27   :  { %v49_v25 = vrot.slane %v48_v21, 2 }
  0x28   :  { %v64_v27 = vrot.slane %v63_v23, 2 }
  0x29   :  { %v50_v29 = vadd.f32 %v49_v25, %v48_v21 }
  0x2a   :  { %v65_v31 = vadd.f32 %v64_v27, %v63_v23 }
  0x2b   :  { %v51_v32 = vrot.slane %v50_v29, 1 }
  0x2c   :  { %v66_v33 = vrot.slane %v65_v31, 1 }
  0x2d   :  { %v52_v34 = vadd.f32 %v51_v32, %v50_v29 }
  0x2e   :  { %v103_v17 = vpop.eup %102  ;;  %v67_v35 = vadd.f32 %v66_v33, %v65_v31 }
  0x2f   :  { %v37_v18 = vsel %vm26_vm0, %v103_v17, 0.0  ;;  %v68_v36 = vmul.f32 0.025, %v52_v34 }
  0x30   :  { %v38_v20 = vrot.slane %v37_v18, 4  ;;  %v70_v40 = vmul.f32 0.875, %v67_v35 }
  0x32   :  { %v39_v22 = vadd.f32 %v38_v20, %v37_v18 }
  0x34   :  { %v40_v24 = vrot.slane %v39_v22, 2 }
  0x36   :  { %v41_v26 = vadd.f32 %v40_v24, %v39_v22 }
  0x38   :  { %v42_v28 = vrot.slane %v41_v26, 1 }
  0x3a   :  { %v43_v30 = vadd.f32 %v42_v28, %v41_v26 }
  0x3c   :  { %104 = vlog2.f32 %v43_v30 }
  0x46   :  { %v105_v37 = vpop.eup %104 }
  0x47   :  { %v45_v39 = vmul.f32 0.6931472, %v105_v37 }
  0x49   :  { %v69_v41 = vsub.f32 %v45_v39, %v68_v36 }
  0x4b   :  { %v71_v42 = vsub.f32 %v69_v41, %v70_v40 }
  0x4d   :  { %v78_v43 = vsel %vm77_vm2, %v71_v42, 0.0 }
  0x4e   :  { %79 = vadd.xlane.f32.xlu0 %v78_v43 }
  0xdb   :  { %v80_v44 = vpop.xlane.xlu0 %79 }
  0xdc   :  { %v82_v45 = vsel %vm81_vm3, %v80_v44, 0.0 }
  0xdd   :  { %83 = vst [vmem:[#allocation5] sm:$0x1] %v82_v45 }
  0xde   :  { %139 = shalt.err (!%p136_p12)
}
  0xdf   :  { %s140_s27 = scalar_lea.hbm %s204_s2, 16 }
  0xe0   :  { %p141_p13 = scmp.ne.s32.totalorder %s204_s2, %s140_s27  ;;  %p144_p0 = scmp.lt.u32.totalorder %s140_s27, %s204_s2 }
  0xe2   :  { %p146_p1 = pnand %p144_p0, %p141_p13 }
  0xe4   :  { %149 = shalt.err (!%p146_p1)
}
  0xe5   :  { %93 = dma.vmem_to_hbm [thread:$0]  %s91_s1, 16, %s204_s2, [#allocation4]  }
  0xe6   :  { %152 = dma.done.wait [#allocation4], 16  }
  0xe7   :  { %153 = vsyncadd [#allocation4], 4294967280 }
  0xe8   :  { %97 = vsyncpa [#allocation3], 1 }
  0xe9   :  { %98 = vsyncpa [#allocation4], 1 }

</bundles_post_ra>
